<compile_context>
chip_gen: v7x
topology: tpu7x:2x2x1
jax: 0.10.0
libtpu: 0.0.40
codegen_flags: <defaults>
</compile_context>

<pallas_src>
import functools

import jax
import jax.numpy as jnp
from jax import lax
from jax.experimental import pallas as pl
from jax.experimental.pallas import tpu as pltpu

_LANE = 128
_SUB = 8
_MAX_BLOCK_ROWS = 8192   # 8192*128*4B = 4 MiB per f32 input block


def _focal_pow(x, gamma):
    """(x)**gamma, specialized for small integer / half-integer gamma."""
    g2 = float(gamma) * 2.0
    if g2.is_integer() and 0.0 <= g2 <= 8.0:
        k = int(g2)
        ipart, half = divmod(k, 2)
        out = jnp.sqrt(x) if half else None
        for _ in range(ipart):
            out = x if out is None else out * x
        return jnp.ones_like(x) if out is None else out
    return x ** gamma


def _focal_elementwise(x, y, gamma, alpha):
    """Elementwise focal loss (matches torch semantics); used for ragged tail."""
    x = x.astype(jnp.float32)
    y = y.astype(jnp.float32)
    # Numerically-stable BCE with logits (== torch BCEWithLogitsLoss, 'none'):
    #   bce = max(x,0) - x*y + log1p(exp(-|x|))
    # Reuse the log1p term for sigmoid (exact identity, single extra EUP exp):
    #   sigmoid(x) = exp(min(x,0) - log1p(exp(-|x|)))
    L = jnp.log1p(jnp.exp(-jnp.abs(x)))
    bce = jnp.maximum(x, 0.0) - x * y + L
    p = jnp.exp(jnp.minimum(x, 0.0) - L)
    one_minus_pt = y + p - 2.0 * (y * p)                      # == 1 - p_t
    alpha_factor = (1.0 - alpha) + y * (2.0 * alpha - 1.0)    # folded constants
    return bce * alpha_factor * _focal_pow(one_minus_pt, gamma)


def _focal_loss_kernel(pred_ref, true_ref, out_ref, *,
                       gamma, alpha, block_rows, steps_per_split, full_rows):
    s = pl.program_id(0)   # parallel split
    i = pl.program_id(1)   # reduction (arbitrary) axis

    # Output block (8,128) is resident across the reduction axis -> accumulator.
    @pl.when(i == 0)
    def _():
        out_ref[...] = jnp.zeros_like(out_ref)

    loss = _focal_elementwise(pred_ref[...], true_ref[...], gamma, alpha)

    # Intended (unclamped) global row offset of this step. Interior blocks skip
    # masking entirely; the partial tail block and clamped overhang steps mask
    # invalid rows to exactly zero (jnp.where also shields NaN/Inf garbage).
    base_row = (s * steps_per_split + i) * block_rows
    needs_mask = base_row + block_rows > full_rows

    @pl.when(jnp.logical_not(needs_mask))
    def _():
        # Fast path: fold (block_rows,128) -> (8,128) partial sums (pure VPU).
        out_ref[...] += jnp.sum(loss.reshape(-1, _SUB, _LANE), axis=0)

    @pl.when(needs_mask)
    def _():
        grow = base_row + lax.broadcasted_iota(jnp.int32, loss.shape, 0)
        masked = jnp.where(grow < full_rows, loss, 0.0)
        out_ref[...] += jnp.sum(masked.reshape(-1, _SUB, _LANE), axis=0)


def _num_parallel_splits():
    """2 on megacore chips (multiple TensorCores per device), else 1."""
    try:
        kind = jax.devices()[0].device_kind.lower()
    except Exception:
        return 1
    return 2 if ("v7" in kind or "v4" in kind) else 1


def focal_loss(pred, true, gamma=1.5, alpha=0.25, reduction="mean"):
    assert pred.shape == true.shape
    n = pred.size
    full_rows, rem = divmod(n, _LANE)

    # No dtype cast and no pad: stream the original dtype; ragged tail handled
    # below with plain jnp (at most 127 elements).
    pred_flat = jnp.reshape(pred, (-1,))
    true_flat = jnp.reshape(true, (-1,))

    total = jnp.float32(0.0)

    if full_rows > 0:
        pred_2d = pred_flat[: full_rows * _LANE].reshape(full_rows, _LANE)
        true_2d = true_flat[: full_rows * _LANE].reshape(full_rows, _LANE)

        block_rows = min(_MAX_BLOCK_ROWS, ((full_rows + _SUB - 1) // _SUB) * _SUB)
        total_blocks = -(-full_rows // block_rows)
        splits = _num_parallel_splits()
        num_splits = splits if total_blocks >= splits else 1
        steps = -(-total_blocks // num_splits)
        last_block = total_blocks - 1

        kernel = functools.partial(
            _focal_loss_kernel,
            gamma=float(gamma), alpha=float(alpha),
            block_rows=block_rows, steps_per_split=steps, full_rows=full_rows)

        def in_map(s, i):
            # Clamp so overhanging steps of the last split stay in bounds; the
            # in-kernel mask (built from unclamped indices) zeroes their output.
            return (jnp.minimum(s * steps + i, last_block), 0)

        partials = pl.pallas_call(
            kernel,
            out_shape=jax.ShapeDtypeStruct((num_splits * _SUB, _LANE), jnp.float32),
            grid_spec=pltpu.PrefetchScalarGridSpec(
                num_scalar_prefetch=0,
                grid=(num_splits, steps),
                in_specs=[
                    pl.BlockSpec((block_rows, _LANE), in_map),
                    pl.BlockSpec((block_rows, _LANE), in_map),
                ],
                out_specs=pl.BlockSpec((_SUB, _LANE), lambda s, i: (s, 0)),
            ),
            compiler_params=pltpu.CompilerParams(
                dimension_semantics=("parallel", "arbitrary"),
                vmem_limit_bytes=32 * 1024 * 1024),
        )(pred_2d, true_2d)

        total = total + jnp.sum(partials)

    if rem:
        # Ragged tail (< 128 elements): plain jnp, no full-array pad pass.
        tail_p = pred_flat[full_rows * _LANE:]
        tail_t = true_flat[full_rows * _LANE:]
        total = total + jnp.sum(
            _focal_elementwise(tail_p, tail_t, float(gamma), float(alpha)))

    if reduction == "mean":
        return total / jnp.float32(n)
    elif reduction == "sum":
        return total
    else:
        # TODO(synk): reduction='none' (full elementwise output) not implemented.
        raise NotImplementedError("reduction='none' not supported")


def _focal_loss_ref(pred, true, gamma=1.5, alpha=0.25):
    x = pred.astype(jnp.float32)
    y = true.astype(jnp.float32)
    bce = jnp.maximum(x, 0.0) - x * y + jnp.log1p(jnp.exp(-jnp.abs(x)))
    p = jax.nn.sigmoid(x)
    p_t = y * p + (1.0 - y) * (1.0 - p)
    af = y * alpha + (1.0 - y) * (1.0 - alpha)
    mod = (1.0 - p_t) ** gamma
    return jnp.mean(bce * af * mod)


if __name__ == "__main__":
    key = jax.random.PRNGKey(0)
    k1, k2 = jax.random.split(key)

    # Small NCHW-shaped logits / binary targets (e.g. detection objectness map).
    shape = (2, 4, 16, 16)
    pred = jax.random.normal(k1, shape, dtype=jnp.float32) * 2.0
    true = (jax.random.uniform(k2, shape) > 0.5).astype(jnp.float32)

    loss = focal_loss(pred, true, gamma=1.5, alpha=0.25)
    jax.block_until_ready(loss)

    ref = _focal_loss_ref(pred, true, gamma=1.5, alpha=0.25)
    assert jnp.allclose(loss, ref, rtol=1e-5, atol=1e-5), (loss, ref)

    print("KERNEL_OK")
</pallas_src>

<mosaic_0001>
module attributes {stable_mosaic.version = 11 : i64} {
  func.func @_focal_loss_kernel(%arg0: i32, %arg1: i32, %arg2: memref<16x128xf32, #tpu.memory_space<vmem>>, %arg3: memref<16x128xf32, #tpu.memory_space<vmem>>, %arg4: memref<8x128xf32, #tpu.memory_space<vmem>>) attributes {dimension_semantics = [#tpu.dimension_semantics<parallel>, #tpu.dimension_semantics<arbitrary>], iteration_bounds = array<i64: 1, 1>, scalar_prefetch = 0 : i64, scratch_operands = 0 : i64, tpu.core_type = #tpu.core_type<tc>, window_params = [{transform_indices = @transform_0, window_bounds = array<i64: 16, 128>}, {transform_indices = @transform_1, window_bounds = array<i64: 16, 128>}, {transform_indices = @transform_2, window_bounds = array<i64: 8, 128>}]} {
    %c0_i32 = arith.constant 0 : i32
    %0 = arith.cmpi eq, %arg1, %c0_i32 : i32
    %1 = arith.extui %0 : i1 to i32
    %c0_i32_0 = arith.constant 0 : i32
    %2 = arith.cmpi ne, %1, %c0_i32_0 : i32
    scf.if %2 {
      %cst_13 = arith.constant 0.000000e+00 : f32
      %42 = vector.broadcast %cst_13 : f32 to vector<8x128xf32>
      %c0_14 = arith.constant 0 : index
      %c0_15 = arith.constant 0 : index
      %43 = vector.load %arg4[%c0_14, %c0_15] : memref<8x128xf32, #tpu.memory_space<vmem>>, vector<8x128xf32>
      tpu.vector_store %arg4[%c0_14, %c0_15], %42 {strides = array<i32>} : memref<8x128xf32, #tpu.memory_space<vmem>>, vector<8x128xf32>,
    } else {
    }
    %c0 = arith.constant 0 : index
    %c0_1 = arith.constant 0 : index
    %3 = vector.load %arg2[%c0, %c0_1] : memref<16x128xf32, #tpu.memory_space<vmem>>, vector<16x128xf32>
    %c0_2 = arith.constant 0 : index
    %c0_3 = arith.constant 0 : index
    %4 = vector.load %arg3[%c0_2, %c0_3] : memref<16x128xf32, #tpu.memory_space<vmem>>, vector<16x128xf32>
    %5 = math.absf %3 : vector<16x128xf32>
    %cst = arith.constant 0.000000e+00 : f32
    %6 = vector.broadcast %cst : f32 to vector<16x128xf32>
    %7 = arith.subf %6, %5 : vector<16x128xf32>
    %8 = math.exp %7 : vector<16x128xf32>
    %9 = math.log1p %8 : vector<16x128xf32>
    %cst_4 = arith.constant 0.000000e+00 : f32
    %10 = vector.broadcast %cst_4 : f32 to vector<16x128xf32>
    %11 = arith.maximumf %3, %10 : vector<16x128xf32>
    %12 = arith.mulf %3, %4 : vector<16x128xf32>
    %13 = arith.subf %11, %12 : vector<16x128xf32>
    %14 = arith.addf %13, %9 : vector<16x128xf32>
    %cst_5 = arith.constant 0.000000e+00 : f32
    %15 = vector.broadcast %cst_5 : f32 to vector<16x128xf32>
    %16 = arith.minimumf %3, %15 : vector<16x128xf32>
    %17 = arith.subf %16, %9 : vector<16x128xf32>
    %18 = math.exp %17 : vector<16x128xf32>
    %19 = arith.addf %4, %18 : vector<16x128xf32>
    %20 = arith.mulf %4, %18 : vector<16x128xf32>
    %cst_6 = arith.constant 2.000000e+00 : f32
    %21 = vector.broadcast %cst_6 : f32 to vector<16x128xf32>
    %22 = arith.mulf %21, %20 : vector<16x128xf32>
    %23 = arith.subf %19, %22 : vector<16x128xf32>
    %cst_7 = arith.constant -5.000000e-01 : f32
    %24 = vector.broadcast %cst_7 : f32 to vector<16x128xf32>
    %25 = arith.mulf %4, %24 : vector<16x128xf32>
    %cst_8 = arith.constant 7.500000e-01 : f32
    %26 = vector.broadcast %cst_8 : f32 to vector<16x128xf32>
    %27 = arith.addf %26, %25 : vector<16x128xf32>
    %28 = arith.mulf %14, %27 : vector<16x128xf32>
    %29 = math.sqrt %23 : vector<16x128xf32>
    %30 = arith.mulf %29, %23 : vector<16x128xf32>
    %31 = arith.mulf %28, %30 : vector<16x128xf32>
    %c1_i32 = arith.constant 1 : i32
    %32 = arith.muli %arg0, %c1_i32 : i32
    %33 = arith.addi %32, %arg1 : i32
    %c16_i32 = arith.constant 16 : i32
    %34 = arith.muli %33, %c16_i32 : i32
    %c16_i32_9 = arith.constant 16 : i32
    %35 = arith.addi %34, %c16_i32_9 : i32
    %c16_i32_10 = arith.constant 16 : i32
    %36 = arith.cmpi sgt, %35, %c16_i32_10 : i32
    %true = arith.constant true
    %37 = arith.xori %36, %true : i1
    %38 = arith.extui %37 : i1 to i32
    %c0_i32_11 = arith.constant 0 : i32
    %39 = arith.cmpi ne, %38, %c0_i32_11 : i32
    scf.if %39 {
      %c0_13 = arith.constant 0 : index
      %c0_14 = arith.constant 0 : index
      %42 = vector.load %arg4[%c0_13, %c0_14] : memref<8x128xf32, #tpu.memory_space<vmem>>, vector<8x128xf32>
      %43 = vector.shape_cast %31 : vector<16x128xf32> to vector<2x8x128xf32>
      %cst_15 = arith.constant dense<0.000000e+00> : vector<8x128xf32>
      %44 = vector.multi_reduction <add>, %43, %cst_15 [0] : vector<2x8x128xf32> to vector<8x128xf32>
      %45 = arith.addf %42, %44 : vector<8x128xf32>
      %c0_16 = arith.constant 0 : index
      %c0_17 = arith.constant 0 : index
      %46 = vector.load %arg4[%c0_16, %c0_17] : memref<8x128xf32, #tpu.memory_space<vmem>>, vector<8x128xf32>
      tpu.vector_store %arg4[%c0_16, %c0_17], %45 {strides = array<i32>} : memref<8x128xf32, #tpu.memory_space<vmem>>, vector<8x128xf32>,
    } else {
    }
    %40 = arith.extui %36 : i1 to i32
    %c0_i32_12 = arith.constant 0 : i32
    %41 = arith.cmpi ne, %40, %c0_i32_12 : i32
    scf.if %41 {
      %42 = tpu.iota {dimensions = array<i32: 0>} : vector<16x128xi32>
      %43 = vector.broadcast %34 : i32 to vector<16x128xi32>
      %44 = arith.addi %43, %42 : vector<16x128xi32>
      %c16_i32_13 = arith.constant 16 : i32
      %45 = vector.broadcast %c16_i32_13 : i32 to vector<16x128xi32>
      %46 = arith.cmpi slt, %44, %45 : vector<16x128xi32>
      %cst_14 = arith.constant 0.000000e+00 : f32
      %47 = vector.broadcast %cst_14 : f32 to vector<16x128xf32>
      %48 = arith.select %46, %31, %47 : vector<16x128xi1>, vector<16x128xf32>
      %c0_15 = arith.constant 0 : index
      %c0_16 = arith.constant 0 : index
      %49 = vector.load %arg4[%c0_15, %c0_16] : memref<8x128xf32, #tpu.memory_space<vmem>>, vector<8x128xf32>
      %50 = vector.shape_cast %48 : vector<16x128xf32> to vector<2x8x128xf32>
      %cst_17 = arith.constant dense<0.000000e+00> : vector<8x128xf32>
      %51 = vector.multi_reduction <add>, %50, %cst_17 [0] : vector<2x8x128xf32> to vector<8x128xf32>
      %52 = arith.addf %49, %51 : vector<8x128xf32>
      %c0_18 = arith.constant 0 : index
      %c0_19 = arith.constant 0 : index
      %53 = vector.load %arg4[%c0_18, %c0_19] : memref<8x128xf32, #tpu.memory_space<vmem>>, vector<8x128xf32>
      tpu.vector_store %arg4[%c0_18, %c0_19], %52 {strides = array<i32>} : memref<8x128xf32, #tpu.memory_space<vmem>>, vector<8x128xf32>,
    } else {
    }
    return
  }
  func.func @transform_0(%arg0: i32, %arg1: i32) -> (i32, i32) {
    %c1_i32 = arith.constant 1 : i32
    %0 = arith.muli %arg0, %c1_i32 : i32
    %1 = arith.addi %0, %arg1 : i32
    %c0_i32 = arith.constant 0 : i32
    %2 = arith.minsi %1, %c0_i32 : i32
    %c0_i32_0 = arith.constant 0 : i32
    %c0_i32_1 = arith.constant 0 : i32
    return %2, %c0_i32_0 : i32, i32
  }
  func.func @transform_1(%arg0: i32, %arg1: i32) -> (i32, i32) {
    %c1_i32 = arith.constant 1 : i32
    %0 = arith.muli %arg0, %c1_i32 : i32
    %1 = arith.addi %0, %arg1 : i32
    %c0_i32 = arith.constant 0 : i32
    %2 = arith.minsi %1, %c0_i32 : i32
    %c0_i32_0 = arith.constant 0 : i32
    %c0_i32_1 = arith.constant 0 : i32
    return %2, %c0_i32_0 : i32, i32
  }
  func.func @transform_2(%arg0: i32, %arg1: i32) -> (i32, i32) {
    %c0_i32 = arith.constant 0 : i32
    %c0_i32_0 = arith.constant 0 : i32
    return %arg0, %c0_i32 : i32, i32
  }
}

</mosaic_0001>

<bundles_post_ra>
// kernel: tpu_custom_call.1
= control target key start
LH: loop header
LB: loop body
LE: loop exit
PB: predicated region body
PF: predicated region fallthrough
CT: control target
= control target key end

     0   :  { %7 = vsyncpa [#allocation3], 0  ;;  %s342_s0 = inlined_call_operand.hbm [shape: f32[16,128], index: 0, kind: input, shape index: {}]   ;;  %s343_s1 = inlined_call_operand.hbm [shape: f32[16,128], index: 1, kind: input, shape index: {}]   ;;  %s344_s2 = inlined_call_operand.hbm [shape: f32[8,128], index: 2, kind: output, shape index: {}]  }
   0x1   :  { %8 = vsyncpa [#allocation6], 0 }
   0x2   :  { %9 = vsyncpa [#allocation4], 0  ;;  %s286_s9 = smov [#allocation2]   ;;  %s214_s13 = scalar_lea.hbm %s342_s0, 256 }
   0x3   :  { %s21_s10 = sshll.u32 %s286_s9, 4  ;;  %p215_p0 = scmp.ne.s32.totalorder %s342_s0, %s214_s13  ;;  %s22_s10 = int_to_ptr.vmem [resolvable:$true] %s21_s10 }
   0x4   :  { %p218_p1 = scmp.lt.u32.totalorder %s214_s13, %s342_s0 }
   0x6   :  { %p220_p2 = pnand %p218_p1, %p215_p0 }
   0x8   :  { %223 = shalt.err (!%p220_p2)
}
   0x9   :  { %s224_s18 = scalar_lea.vmem %s22_s10, 256  ;;  %p229_p4 = scmp.lt.s32.totalorder %s22_s10, %s22_s10 }
   0xa   :  { %p225_p3 = scmp.ne.s32.totalorder %s22_s10, %s224_s18  ;;  %p230_p5 = scmp.lt.s32.totalorder %s224_s18, %s224_s18 }
   0xc   :  { %p231_p6 = por %p230_p5, %p229_p4 }
   0xe   :  { %p232_p7 = pnand %p231_p6, %p225_p3 }
  0x10   :  { %235 = shalt.err (!%p232_p7)
}
  0x11   :  { %s287_s19 = smov 128   ;;  %s288_s20 = smov 8  }
  0x12   :  { %27 = dma.hbm_to_vmem [thread:$0]  %s342_s0, 256, %s22_s10, [#allocation3], %s287_s19, %s287_s19, %s288_s20  }
  0x13   :  { %s289_s23 = smov [#allocation5]   ;;  %s236_s27 = scalar_lea.hbm %s343_s1, 256 }
  0x14   :  { %s39_s24 = sshll.u32 %s289_s23, 4  ;;  %p237_p8 = scmp.ne.s32.totalorder %s343_s1, %s236_s27  ;;  %s40_s24 = int_to_ptr.vmem [resolvable:$true] %s39_s24 }
  0x15   :  { %p240_p9 = scmp.lt.u32.totalorder %s236_s27, %s343_s1 }
  0x17   :  { %p242_p10 = pnand %p240_p9, %p237_p8 }
  0x19   :  { %245 = shalt.err (!%p242_p10)
}
  0x1a   :  { %s246_s4 = scalar_lea.vmem %s40_s24, 256  ;;  %p251_p12 = scmp.lt.s32.totalorder %s40_s24, %s40_s24 }
  0x1b   :  { %p247_p11 = scmp.ne.s32.totalorder %s40_s24, %s246_s4  ;;  %p252_p13 = scmp.lt.s32.totalorder %s246_s4, %s246_s4 }
  0x1d   :  { %p253_p0 = por %p252_p13, %p251_p12 }
  0x1f   :  { %p254_p1 = pnand %p253_p0, %p247_p11 }
  0x21   :  { %257 = shalt.err (!%p254_p1)
}
  0x22   :  { %45 = dma.hbm_to_vmem [thread:$0]  %s343_s1, 256, %s40_s24, [#allocation6], %s287_s19, %s287_s19, %s288_s20  }
  0x23   :  { %280 = dma.done.wait [#allocation3], 256  }
  0x24   :  { %281 = vsyncadd [#allocation3], 4294967040 }
  0x25   :  { %282 = dma.done.wait [#allocation6], 256  }
  0x26   :  { %283 = vsyncadd [#allocation6], 4294967040  ;;  %v65_v0 = vld [vmem:[#allocation2] sm:$0xff]  ;;  %v66_v1 = vld [vmem:[#allocation2 + $0x8] sm:$0xff]  ;;  %s290_s1 = smov [#allocation7]  }
  0x27   :  { %v69_v2 = vand.u32 2147483647, %v65_v0  ;;  %v70_v3 = vand.u32 2147483647, %v66_v1  ;;  %v103_v21 = vmin.f32 %v65_v0, 0.0  ;;  %v104_v24 = vmin.f32 %v66_v1, 0.0 }
  0x28   :  { %v67_v32 = vld [vmem:[#allocation5] sm:$0xff]  ;;  %v68_v33 = vld [vmem:[#allocation5 + $0x8] sm:$0xff]  ;;  %v95_v44 = vmax.f32 %v65_v0, 0.0  ;;  %v96_v46 = vmax.f32 %v66_v1, 0.0  ;;  %s178_s6 = sshll.u32 %s290_s1, 4  ;;  %s179_s6 = int_to_ptr.vmem [resolvable:$true] %s178_s6 }
  0x29   :  { %v71_v4 = vsub.f32 0.0, %v69_v2  ;;  %v72_v5 = vsub.f32 0.0, %v70_v3  ;;  %v97_v45 = vmul.f32 %v67_v32, %v65_v0  ;;  %v98_v47 = vmul.f32 %v68_v33, %v66_v1  ;;  %s258_s7 = scalar_lea.vmem %s179_s6, 128  ;;  %p263_p3 = scmp.lt.s32.totalorder %s179_s6, %s179_s6 }
  0x2a   :  { %v119_v49 = vmul.f32 -0.5, %v67_v32  ;;  %v120_v51 = vmul.f32 -0.5, %v68_v33  ;;  %p259_p2 = scmp.ne.s32.totalorder %s179_s6, %s258_s7  ;;  %p264_p4 = scmp.lt.s32.totalorder %s258_s7, %s258_s7 }
  0x2b   :  { %v73_v6 = vmul.f32 1.442695, %v71_v4  ;;  %v75_v7 = vmul.f32 1.442695, %v72_v5  ;;  %v99_v48 = vsub.f32 %v95_v44, %v97_v45  ;;  %v100_v50 = vsub.f32 %v96_v46, %v98_v47 }
  0x2c   :  { %v121_v53 = vadd.f32 0.75, %v119_v49  ;;  %v122_v56 = vadd.f32 0.75, %v120_v51  ;;  %p265_p5 = por %p264_p4, %p263_p3 }
  0x2d   :  { %198 = vpow2.f32 %v73_v6 }
  0x2e   :  { %200 = vpow2.f32 %v75_v7  ;;  %p266_p6 = pnand %p265_p5, %p259_p2 }
  0x37   :  { %v199_v8 = vpop.eup %198 }
  0x38   :  { %v201_v9 = vpop.eup %200  ;;  %v77_v10 = vadd.f32 1.0, %v199_v8  ;;  %v80_v12 = vmul.f32 -0.5, %v199_v8  ;;  %v83_v15 = vand.u32 2147483647, %v199_v8 }
  0x39   :  { %v86_v11 = vadd.f32 1.0, %v201_v9  ;;  %v89_v13 = vmul.f32 -0.5, %v201_v9  ;;  %v92_v17 = vand.u32 2147483647, %v201_v9 }
  0x3a   :  { %202 = vlog2.f32 %v77_v10  ;;  %v81_v14 = vadd.f32 1.0, %v80_v12  ;;  %vm84_vm0 = vcmp.lt.f32.partialorder %v83_v15, 0.0004427343 }
  0x3b   :  { %204 = vlog2.f32 %v86_v11  ;;  %v90_v16 = vadd.f32 1.0, %v89_v13  ;;  %vm93_vm1 = vcmp.lt.f32.partialorder %v92_v17, 0.0004427343 }
  0x3c   :  { %v82_v18 = vmul.f32 %v199_v8, %v81_v14 }
  0x3d   :  { %v91_v20 = vmul.f32 %v201_v9, %v90_v16 }
  0x44   :  { %v203_v19 = vpop.eup %202 }
  0x45   :  { %v205_v22 = vpop.eup %204  ;;  %v79_v23 = vmul.f32 0.6931472, %v203_v19 }
  0x46   :  { %v88_v25 = vmul.f32 0.6931472, %v205_v22 }
  0x47   :  { %v85_v26 = vsel %vm84_vm0, %v82_v18, %v79_v23 }
  0x48   :  { %v94_v27 = vsel %vm93_vm1, %v91_v20, %v88_v25  ;;  %v105_v28 = vsub.f32 %v103_v21, %v85_v26  ;;  %v101_v52 = vadd.f32 %v99_v48, %v85_v26 }
  0x49   :  { %v106_v29 = vsub.f32 %v104_v24, %v94_v27  ;;  %v102_v55 = vadd.f32 %v100_v50, %v94_v27 }
  0x4a   :  { %v107_v30 = vmul.f32 1.442695, %v105_v28  ;;  %v123_v62 = vmul.f32 %v121_v53, %v101_v52 }
  0x4b   :  { %v109_v31 = vmul.f32 1.442695, %v106_v29  ;;  %v124_v0 = vmul.f32 %v122_v56, %v102_v55 }
  0x4c   :  { %206 = vpow2.f32 %v107_v30 }
  0x4d   :  { %208 = vpow2.f32 %v109_v31 }
  0x56   :  { %v207_v34 = vpop.eup %206 }
  0x57   :  { %v209_v35 = vpop.eup %208  ;;  %v111_v36 = vadd.f32 %v207_v34, %v67_v32  ;;  %v113_v37 = vmul.f32 %v207_v34, %v67_v32 }
  0x58   :  { %v112_v38 = vadd.f32 %v209_v35, %v68_v33  ;;  %v114_v39 = vmul.f32 %v209_v35, %v68_v33 }
  0x59   :  { %v115_v40 = vmul.f32 2.0, %v113_v37 }
  0x5a   :  { %v116_v41 = vmul.f32 2.0, %v114_v39 }
  0x5b   :  { %v117_v42 = vsub.f32 %v111_v36, %v115_v40 }
  0x5c   :  { %v118_v43 = vsub.f32 %v112_v38, %v116_v41 }
  0x5d   :  { %210 = vrsqrt.f32 %v117_v42  ;;  %vm127_vm2 = vcmp.eq.f32.partialorder %v117_v42, inf  ;;  %v130_v57 = vand.u32 2147483648, %v117_v42  ;;  %vm129_vm3 = vcmp.eq.f32.partialorder %v117_v42, 0.0 }
  0x5e   :  { %212 = vrsqrt.f32 %v118_v43  ;;  %vm134_vm4 = vcmp.eq.f32.partialorder %v118_v43, inf  ;;  %v137_v60 = vand.u32 2147483648, %v118_v43  ;;  %vm136_vm5 = vcmp.eq.f32.partialorder %v118_v43, 0.0 }
  0x67   :  { %v211_v54 = vpop.eup %210 }
  0x68   :  { %v213_v58 = vpop.eup %212  ;;  %v126_v59 = vmul.f32 %v211_v54, %v117_v42 }
  0x69   :  { %v133_v61 = vmul.f32 %v213_v58, %v118_v43 }
  0x6a   :  { %v128_v63 = vsel %vm127_vm2, %v117_v42, %v126_v59 }
  0x6b   :  { %v131_v1 = vsel %vm129_vm3, %v130_v57, %v128_v63  ;;  %v135_v2 = vsel %vm134_vm4, %v118_v43, %v133_v61 }
  0x6c   :  { %v138_v3 = vsel %vm136_vm5, %v137_v60, %v135_v2  ;;  %v139_v4 = vmul.f32 %v131_v1, %v117_v42 }
  0x6d   :  { %v140_v5 = vmul.f32 %v138_v3, %v118_v43 }
  0x6e   :  { %v141_v6 = vmul.f32 %v139_v4, %v123_v62 }
  0x6f   :  { %v142_v7 = vmul.f32 %v140_v5, %v124_v0 }
  0x71   :  { %v152_v8 = vadd.f32 %v142_v7, %v141_v6 }
  0x73   :  { %154 = vst [vmem:[#allocation7] sm:$0xff] %v152_v8 }
  0x74   :  { %269 = shalt.err (!%p266_p6)
}
  0x75   :  { %s270_s10 = scalar_lea.hbm %s344_s2, 128 }
  0x76   :  { %p271_p7 = scmp.ne.s32.totalorder %s344_s2, %s270_s10  ;;  %p274_p8 = scmp.lt.u32.totalorder %s270_s10, %s344_s2 }
  0x78   :  { %p276_p9 = pnand %p274_p8, %p271_p7 }
  0x7a   :  { %279 = shalt.err (!%p276_p9)
}
  0x7b   :  { %181 = dma.vmem_to_hbm [thread:$0]  %s179_s6, 128, %s344_s2, [#allocation4]  }
  0x7c   :  { %284 = dma.done.wait [#allocation4], 128  }
  0x7d   :  { %285 = vsyncadd [#allocation4], 4294967168 }
  0x7e   :  { %185 = vsyncpa [#allocation3], 1 }
  0x7f   :  { %186 = vsyncpa [#allocation6], 1 }
  0x80   :  { %187 = vsyncpa [#allocation4], 1 }

</bundles_post_ra>
